<compile_context>
chip_gen: v5e
topology: v5e:2x2
jax: 0.10.0
libtpu: 0.0.40
codegen_flags: <defaults>
</compile_context>

<pallas_src>
import math
import jax
import jax.numpy as jnp
from jax import lax
from jax.experimental import pallas as pl
from jax.experimental.pallas import tpu as pltpu


def _round_up(a, b):
    return ((a + b - 1) // b) * b


def _gelu(x, approximate=False):
    if approximate:
        # tanh approximation -> runs on the EUP (separate bundle slot).
        c = 0.7978845608028654  # sqrt(2/pi)
        return 0.5 * x * (1.0 + jnp.tanh(c * (x + 0.044715 * x * x * x)))
    # exact erf-based GELU == nn.GELU() default
    return 0.5 * x * (1.0 + lax.erf(x * 0.7071067811865475))


def _make_mlp_kernel(compute_dtype, approximate_gelu):
    def kernel(x_ref, w1_ref, b1_ref, w2_ref, b2_ref, o_ref, acc_ref):
        j = pl.program_id(1)

        @pl.when(j == 0)
        def _init():
            acc_ref[...] = jnp.zeros_like(acc_ref)

        # first matmul on the hidden-dim chunk: (tm, C_in) @ (C_in, th) -> f32
        h = jnp.dot(x_ref[...], w1_ref[...],
                    preferred_element_type=jnp.float32)
        h = h + b1_ref[...]                       # bias + GELU in f32
        h = _gelu(h, approximate_gelu)

        # second matmul, accumulated over hidden-dim chunks in f32 scratch
        acc_ref[...] += jnp.dot(h.astype(compute_dtype), w2_ref[...],
                                preferred_element_type=jnp.float32)

        @pl.when(j == pl.num_programs(1) - 1)
        def _finalize():
            o_ref[...] = (acc_ref[...] + b2_ref[...]).astype(o_ref.dtype)

    return kernel


def mlp_pallas(x, w1, b1, w2, b2, *, tm=256, th=512,
               compute_dtype=jnp.bfloat16, approximate_gelu=False):
    """x: (B, N, C_in); w1: (C_in, H); b1: (H,); w2: (H, C_out); b2: (C_out,)."""
    orig_dtype = x.dtype
    B, N, C_in = x.shape
    H = w1.shape[1]
    C_out = w2.shape[1]
    M = B * N

    # --- pad feature dims to multiples of 128 lanes, rows to the row tile ---
    C_in_p = _round_up(C_in, 128)
    C_out_p = _round_up(C_out, 128)
    H_128 = _round_up(H, 128)

    tm = min(tm, _round_up(M, 8))          # don't over-tile tiny inputs
    th = min(th, H_128)
    M_p = _round_up(M, tm)
    H_p = _round_up(H, th)

    x_p = jnp.pad(x.reshape(M, C_in).astype(compute_dtype),
                  ((0, M_p - M), (0, C_in_p - C_in)))
    w1_p = jnp.pad(w1.astype(compute_dtype),
                   ((0, C_in_p - C_in), (0, H_p - H)))
    b1_p = jnp.pad(b1.astype(jnp.float32).reshape(1, H),
                   ((0, 0), (0, H_p - H)))
    w2_p = jnp.pad(w2.astype(compute_dtype),
                   ((0, H_p - H), (0, C_out_p - C_out)))
    b2_p = jnp.pad(b2.astype(jnp.float32).reshape(1, C_out),
                   ((0, 0), (0, C_out_p - C_out)))

    grid = (M_p // tm, H_p // th)

    # --- VMEM budget (double-buffered tiles + f32 accumulator) ---
    cb = jnp.dtype(compute_dtype).itemsize
    ob = jnp.dtype(orig_dtype).itemsize
    vmem_est = (2 * tm * C_in_p * cb        # x row tile
                + 2 * C_in_p * th * cb      # w1 chunk
                + 2 * th * 4                # b1 chunk
                + 2 * th * C_out_p * cb     # w2 chunk
                + 2 * C_out_p * 4           # b2
                + 2 * tm * C_out_p * ob     # out tile
                + tm * C_out_p * 4)         # accumulator scratch
    vmem_limit = int(min(96 * 1024 * 1024, max(2 * vmem_est, 16 * 1024 * 1024)))

    cost = pl.CostEstimate(
        flops=2 * M_p * (C_in_p * H_p + H_p * C_out_p),
        transcendentals=M_p * H_p,
        bytes_accessed=(x_p.size * cb + w1_p.size * cb + w2_p.size * cb
                        + b1_p.size * 4 + b2_p.size * 4 + M_p * C_out_p * ob))

    out_p = pl.pallas_call(
        _make_mlp_kernel(compute_dtype, approximate_gelu),
        out_shape=jax.ShapeDtypeStruct((M_p, C_out_p), orig_dtype),
        grid_spec=pltpu.PrefetchScalarGridSpec(
            num_scalar_prefetch=0,
            grid=grid,
            in_specs=[
                pl.BlockSpec((tm, C_in_p), lambda i, j: (i, 0)),
                pl.BlockSpec((C_in_p, th), lambda i, j: (0, j)),
                pl.BlockSpec((1, th), lambda i, j: (0, j)),
                pl.BlockSpec((th, C_out_p), lambda i, j: (j, 0)),
                pl.BlockSpec((1, C_out_p), lambda i, j: (0, 0)),
            ],
            out_specs=pl.BlockSpec((tm, C_out_p), lambda i, j: (i, 0)),
            scratch_shapes=[pltpu.VMEM((tm, C_out_p), jnp.float32)],
        ),
        compiler_params=pltpu.CompilerParams(
            dimension_semantics=("parallel", "arbitrary"),
            vmem_limit_bytes=vmem_limit),
        cost_estimate=cost,
    )(x_p, w1_p, b1_p, w2_p, b2_p)

    return out_p[:M, :C_out].reshape(B, N, C_out)


def init_mlp_params(key, in_features, hidden_features, out_features,
                    dtype=jnp.float32):
    # Deterministic init mimicking nn.Linear (uniform +- 1/sqrt(fan_in)).
    k1, k2, k3, k4 = jax.random.split(key, 4)
    lim1 = 1.0 / math.sqrt(in_features)
    lim2 = 1.0 / math.sqrt(hidden_features)
    w1 = jax.random.uniform(k1, (in_features, hidden_features),
                            dtype, -lim1, lim1)
    b1 = jax.random.uniform(k2, (hidden_features,), dtype, -lim1, lim1)
    w2 = jax.random.uniform(k3, (hidden_features, out_features),
                            dtype, -lim2, lim2)
    b2 = jax.random.uniform(k4, (out_features,), dtype, -lim2, lim2)
    return w1, b1, w2, b2


if __name__ == "__main__":
    B, N = 2, 8                     # batch, sequence length
    in_features = 32
    hidden_features = 64
    out_features = 32

    key = jax.random.PRNGKey(0)
    kx, kp = jax.random.split(key)
    x = jax.random.normal(kx, (B, N, in_features), dtype=jnp.float32)
    w1, b1, w2, b2 = init_mlp_params(kp, in_features, hidden_features,
                                     out_features)

    out = mlp_pallas(x, w1, b1, w2, b2)     # bf16 matmuls, f32 accumulation
    jax.block_until_ready(out)

    # reference (f32, exact-erf GELU = nn.GELU() default)
    ref = _gelu(x @ w1 + b1) @ w2 + b2
    assert out.shape == (B, N, out_features)
    err = float(jnp.max(jnp.abs(out.astype(jnp.float32) - ref)))
    # bf16 matmul inputs vs f32 torch-style reference -> loose tolerance
    assert err < 6e-2, f"max abs error {err}"
    print("KERNEL_OK")
</pallas_src>

<mosaic_0001>
module attributes {stable_mosaic.version = 11 : i64} {
  func.func @kernel(%arg0: i32, %arg1: i32, %arg2: memref<16x128xbf16, #tpu.memory_space<vmem>>, %arg3: memref<128x128xbf16, #tpu.memory_space<vmem>>, %arg4: memref<1x128xf32, #tpu.memory_space<vmem>>, %arg5: memref<128x128xbf16, #tpu.memory_space<vmem>>, %arg6: memref<1x128xf32, #tpu.memory_space<vmem>>, %arg7: memref<16x128xf32, #tpu.memory_space<vmem>>, %arg8: memref<16x128xf32, #tpu.memory_space<vmem>>) attributes {dimension_semantics = [#tpu.dimension_semantics<parallel>, #tpu.dimension_semantics<arbitrary>], iteration_bounds = array<i64: 1, 1>, scalar_prefetch = 0 : i64, scratch_operands = 1 : i64, tpu.core_type = #tpu.core_type<tc>, window_params = [{transform_indices = @transform_0, window_bounds = array<i64: 16, 128>}, {transform_indices = @transform_1, window_bounds = array<i64: 128, 128>}, {transform_indices = @transform_2, window_bounds = array<i64: 1, 128>}, {transform_indices = @transform_3, window_bounds = array<i64: 128, 128>}, {pipeline_mode = #tpu.pipeline_mode<synchronous>, transform_indices = @transform_4, window_bounds = array<i64: 1, 128>}, {transform_indices = @transform_5, window_bounds = array<i64: 16, 128>}]} {
    %c0_i32 = arith.constant 0 : i32
    %0 = arith.cmpi eq, %arg1, %c0_i32 : i32
    %1 = arith.extui %0 : i1 to i32
    %c0_i32_0 = arith.constant 0 : i32
    %2 = arith.cmpi ne, %1, %c0_i32_0 : i32
    scf.if %2 {
      %cst_18 = arith.constant 0.000000e+00 : f32
      %26 = vector.broadcast %cst_18 : f32 to vector<16x128xf32>
      %c0_19 = arith.constant 0 : index
      %c0_20 = arith.constant 0 : index
      %27 = vector.load %arg8[%c0_19, %c0_20] : memref<16x128xf32, #tpu.memory_space<vmem>>, vector<16x128xf32>
      tpu.vector_store %arg8[%c0_19, %c0_20], %26 {strides = array<i32>} : memref<16x128xf32, #tpu.memory_space<vmem>>, vector<16x128xf32>,
    } else {
    }
    %c0 = arith.constant 0 : index
    %c0_1 = arith.constant 0 : index
    %3 = vector.load %arg2[%c0, %c0_1] : memref<16x128xbf16, #tpu.memory_space<vmem>>, vector<16x128xbf16>
    %c0_2 = arith.constant 0 : index
    %c0_3 = arith.constant 0 : index
    %4 = vector.load %arg3[%c0_2, %c0_3] : memref<128x128xbf16, #tpu.memory_space<vmem>>, vector<128x128xbf16>
    %cst = arith.constant dense<0.000000e+00> : vector<16x128xf32>
    %5 = tpu.matmul %3, %4, %cst {dimension_numbers = #tpu.dot_dimension_numbers<[1], [0], [0], [1], [0, 0, 1, 1], [], []>} : vector<16x128xbf16>, vector<128x128xbf16>, vector<16x128xf32> -> vector<16x128xf32>
    %c0_4 = arith.constant 0 : index
    %c0_5 = arith.constant 0 : index
    %6 = vector.load %arg4[%c0_4, %c0_5] : memref<1x128xf32, #tpu.memory_space<vmem>>, vector<1x128xf32>
    %7 = vector.broadcast %6 : vector<1x128xf32> to vector<16x128xf32>
    %8 = arith.addf %5, %7 : vector<16x128xf32>
    %cst_6 = arith.constant 5.000000e-01 : f32
    %9 = vector.broadcast %cst_6 : f32 to vector<16x128xf32>
    %10 = arith.mulf %9, %8 : vector<16x128xf32>
    %cst_7 = arith.constant 0.707106769 : f32
    %11 = vector.broadcast %cst_7 : f32 to vector<16x128xf32>
    %12 = arith.mulf %8, %11 : vector<16x128xf32>
    %13 = math.erf %12 : vector<16x128xf32>
    %cst_8 = arith.constant 1.000000e+00 : f32
    %14 = vector.broadcast %cst_8 : f32 to vector<16x128xf32>
    %15 = arith.addf %14, %13 : vector<16x128xf32>
    %16 = arith.mulf %10, %15 : vector<16x128xf32>
    %c0_9 = arith.constant 0 : index
    %c0_10 = arith.constant 0 : index
    %17 = vector.load %arg8[%c0_9, %c0_10] : memref<16x128xf32, #tpu.memory_space<vmem>>, vector<16x128xf32>
    %18 = arith.truncf %16 : vector<16x128xf32> to vector<16x128xbf16>
    %c0_11 = arith.constant 0 : index
    %c0_12 = arith.constant 0 : index
    %19 = vector.load %arg5[%c0_11, %c0_12] : memref<128x128xbf16, #tpu.memory_space<vmem>>, vector<128x128xbf16>
    %cst_13 = arith.constant dense<0.000000e+00> : vector<16x128xf32>
    %20 = tpu.matmul %18, %19, %cst_13 {dimension_numbers = #tpu.dot_dimension_numbers<[1], [0], [0], [1], [0, 0, 1, 1], [], []>} : vector<16x128xbf16>, vector<128x128xbf16>, vector<16x128xf32> -> vector<16x128xf32>
    %21 = arith.addf %17, %20 : vector<16x128xf32>
    %c0_14 = arith.constant 0 : index
    %c0_15 = arith.constant 0 : index
    %22 = vector.load %arg8[%c0_14, %c0_15] : memref<16x128xf32, #tpu.memory_space<vmem>>, vector<16x128xf32>
    tpu.vector_store %arg8[%c0_14, %c0_15], %21 {strides = array<i32>} : memref<16x128xf32, #tpu.memory_space<vmem>>, vector<16x128xf32>,
    %c0_i32_16 = arith.constant 0 : i32
    %23 = arith.cmpi eq, %arg1, %c0_i32_16 : i32
    %24 = arith.extui %23 : i1 to i32
    %c0_i32_17 = arith.constant 0 : i32
    %25 = arith.cmpi ne, %24, %c0_i32_17 : i32
    scf.if %25 {
      %c0_18 = arith.constant 0 : index
      %c0_19 = arith.constant 0 : index
      %26 = vector.load %arg8[%c0_18, %c0_19] : memref<16x128xf32, #tpu.memory_space<vmem>>, vector<16x128xf32>
      %c0_20 = arith.constant 0 : index
      %c0_21 = arith.constant 0 : index
      %27 = vector.load %arg6[%c0_20, %c0_21] : memref<1x128xf32, #tpu.memory_space<vmem>>, vector<1x128xf32>
      %28 = vector.broadcast %27 : vector<1x128xf32> to vector<16x128xf32>
      %29 = arith.addf %26, %28 : vector<16x128xf32>
      %c0_22 = arith.constant 0 : index
      %c0_23 = arith.constant 0 : index
      %30 = vector.load %arg7[%c0_22, %c0_23] : memref<16x128xf32, #tpu.memory_space<vmem>>, vector<16x128xf32>
      tpu.vector_store %arg7[%c0_22, %c0_23], %29 {strides = array<i32>} : memref<16x128xf32, #tpu.memory_space<vmem>>, vector<16x128xf32>,
    } else {
    }
    return
  }
  func.func @transform_0(%arg0: i32, %arg1: i32) -> (i32, i32) {
    %c0_i32 = arith.constant 0 : i32
    %c0_i32_0 = arith.constant 0 : i32
    return %arg0, %c0_i32 : i32, i32
  }
  func.func @transform_1(%arg0: i32, %arg1: i32) -> (i32, i32) {
    %c0_i32 = arith.constant 0 : i32
    %c0_i32_0 = arith.constant 0 : i32
    return %c0_i32, %arg1 : i32, i32
  }
  func.func @transform_2(%arg0: i32, %arg1: i32) -> (i32, i32) {
    %c0_i32 = arith.constant 0 : i32
    %c0_i32_0 = arith.constant 0 : i32
    return %c0_i32, %arg1 : i32, i32
  }
  func.func @transform_3(%arg0: i32, %arg1: i32) -> (i32, i32) {
    %c0_i32 = arith.constant 0 : i32
    %c0_i32_0 = arith.constant 0 : i32
    return %arg1, %c0_i32 : i32, i32
  }
  func.func @transform_4(%arg0: i32, %arg1: i32) -> (i32, i32) {
    %c0_i32 = arith.constant 0 : i32
    %c0_i32_0 = arith.constant 0 : i32
    %c0_i32_1 = arith.constant 0 : i32
    return %c0_i32, %c0_i32_0 : i32, i32
  }
  func.func @transform_5(%arg0: i32, %arg1: i32) -> (i32, i32) {
    %c0_i32 = arith.constant 0 : i32
    %c0_i32_0 = arith.constant 0 : i32
    return %arg0, %c0_i32 : i32, i32
  }
}

</mosaic_0001>

<bundles_post_ra>
// kernel: tpu_custom_call.1
= control target key start
LH: loop header
LB: loop body
LE: loop exit
PB: predicated region body
PF: predicated region fallthrough
CT: control target
= control target key end

     0   :  { %10 = vsyncpa [#allocation4], 0  ;;  %s647_s0 = inlined_call_operand.hbm [shape: bf16[16,128], index: 0, kind: input, shape index: {}]   ;;  %s648_s1 = inlined_call_operand.hbm [shape: bf16[128,128], index: 1, kind: input, shape index: {}]   ;;  %s649_s2 = inlined_call_operand.vmem [shape: f32[1,128], index: 2, kind: input, shape index: {}]   ;;  %s650_s3 = inlined_call_operand.hbm [shape: bf16[128,128], index: 3, kind: input, shape index: {}]   ;;  %s651_s4 = inlined_call_operand.vmem [shape: f32[1,128], index: 4, kind: input, shape index: {}]   ;;  %s652_s5 = inlined_call_operand.hbm [shape: f32[16,128], index: 5, kind: output, shape index: {}]  }
   0x1   :  { %11 = vsyncpa [#allocation7], 0 }
   0x2   :  { %12 = vsyncpa [#allocation5], 0  ;;  %s30_s20 = sshll.u32 %s648_s1, 4  ;;  %s573_s21 = smov [#allocation6]   ;;  %s31_s20 = int_to_ptr.hbm [resolvable:$true] %s30_s20 }
   0x3   :  { %s32_s22 = sshll.u32 %s573_s21, 4  ;;  %s17_s25 = sshll.u32 %s647_s0, 4  ;;  %s33_s22 = int_to_ptr.vmem [resolvable:$true] %s32_s22  ;;  %s18_s25 = int_to_ptr.hbm [resolvable:$true] %s17_s25 }
   0x4   :  { %s574_s26 = smov 64   ;;  %s575_s27 = smov 4  }
   0x5   :  { %38 = dma.hbm_to_vmem [thread:$0]  %s31_s20, 1024, %s33_s22, [#allocation7], %s574_s26, %s574_s26, %s575_s27  }
   0x6   :  { %s576_s28 = smov [#allocation3]   ;;  %s45_s7 = sshll.u32 %s650_s3, 4  ;;  %s46_s7 = int_to_ptr.hbm [resolvable:$true] %s45_s7 }
   0x7   :  { %s19_s29 = sshll.u32 %s576_s28, 4  ;;  %s577_s1 = smov [#allocation8]   ;;  %s20_s29 = int_to_ptr.vmem [resolvable:$true] %s19_s29 }
   0x8   :  { %25 = dma.hbm_to_vmem [thread:$0]  %s18_s25, 128, %s20_s29, [#allocation4], %s574_s26, %s574_s26, %s575_s27  }
   0x9   :  { %s47_s8 = sshll.u32 %s577_s1, 4  ;;  %s48_s8 = int_to_ptr.vmem [resolvable:$true] %s47_s8 }
   0xa   :  { %53 = dma.hbm_to_vmem [thread:$0]  %s46_s7, 1024, %s48_s8, [#allocation7], %s574_s26, %s574_s26, %s575_s27  }
   0xb   :  { %567 = dma.done.wait [#allocation4], 128  }
   0xc   :  { %568 = vsyncadd [#allocation4], 4294967168 }
   0xd   :  { %569 = dma.done.wait [#allocation7], 2048  }
   0xe   :  { %570 = vsyncadd [#allocation7], 4294965248  ;;  %v448_v0 = vld [vmem:[#allocation6 + $0x38] sm:$0xff]  ;;  %v447_v1 = vld [vmem:[#allocation6 + $0x30] sm:$0xff]  ;;  %s578_s10 = smov [#allocation9]   ;;  %s356_s14 = sshll.u32 %s652_s5, 4  ;;  %s357_s14 = int_to_ptr.hbm [resolvable:$true] %s356_s14 }
   0xf   :  { %150 = vmatpush.bf16.msra.mxu0 %v448_v0  ;;  %v446_v2 = vld [vmem:[#allocation6 + $0x28] sm:$0xff]  ;;  %v445_v3 = vld [vmem:[#allocation6 + $0x20] sm:$0xff]  ;;  %v444_v4 = vld [vmem:[#allocation6 + $0x18] sm:$0xff]  ;;  %s354_s11 = sshll.u32 %s578_s10, 4  ;;  %s579_s15 = smov 128   ;;  %s355_s11 = int_to_ptr.vmem [resolvable:$true] %s354_s11 }
  0x10   :  { %v443_v5 = vld [vmem:[#allocation6 + $0x10] sm:$0xff]  ;;  %v442_v6 = vld [vmem:[#allocation6 + $0x8] sm:$0xff]  ;;  %v441_v7 = vld [vmem:[#allocation6] sm:$0xff]  ;;  %s580_s16 = smov 8  }
  0x11   :  { %v440_v8 = vld [vmem:[#allocation3] sm:$0xff]  ;;  %v455_v14 = vld [vmem:[#allocation8 + $0x30] sm:$0xff]  ;;  %v454_v16 = vld [vmem:[#allocation8 + $0x28] sm:$0xff] }
  0x12   :  { %v465_v9 = vld [vmem:[%s649_s2] ss:$0 sm:$0xff]  ;;  %v453_v21 = vld [vmem:[#allocation8 + $0x20] sm:$0xff]  ;;  %v451_v33 = vld [vmem:[#allocation8 + $0x10] sm:$0xff] }
  0x13   :  { %151 = vmatpush.bf16.msra.mxu0 %v447_v1  ;;  %v456_v10 = vld [vmem:[#allocation8 + $0x38] sm:$0xff]  ;;  %v450_v41 = vld [vmem:[#allocation8 + $0x8] sm:$0xff]  ;;  %v449_v48 = vld [vmem:[#allocation8] sm:$0xff] }
  0x14   :  { %319 = vmatpush.bf16.msra.mxu1 %v456_v10  ;;  %v452_v27 = vld [vmem:[#allocation8 + $0x18] sm:$0xff] }
  0x17   :  { %152 = vmatpush.bf16.msra.mxu0 %v446_v2 }
  0x18   :  { %320 = vmatpush.bf16.msra.mxu1 %v455_v14 }
  0x1b   :  { %153 = vmatpush.bf16.msra.mxu0 %v445_v3 }
  0x1c   :  { %321 = vmatpush.bf16.msra.mxu1 %v454_v16 }
  0x1f   :  { %154 = vmatpush.bf16.msra.mxu0 %v444_v4 }
  0x20   :  { %322 = vmatpush.bf16.msra.mxu1 %v453_v21 }
  0x23   :  { %155 = vmatpush.bf16.msra.mxu0 %v443_v5 }
  0x24   :  { %323 = vmatpush.bf16.msra.mxu1 %v452_v27 }
  0x27   :  { %156 = vmatpush.bf16.msra.mxu0 %v442_v6 }
  0x28   :  { %324 = vmatpush.bf16.msra.mxu1 %v451_v33 }
  0x2b   :  { %157 = vmatpush.bf16.msra.mxu0 %v441_v7 }
  0x2c   :  { %325 = vmatpush.bf16.msra.mxu1 %v450_v41 }
  0x2e   :  { %158 = vmatmul.bf16.vlgmr.msra.gmra.mxu0 %v440_v8 }
  0x30   :  { %326 = vmatpush.bf16.msra.mxu1 %v449_v48 }
  0xab   :  { %v159_v11 = vpop.f32.mrf.mxu0 }
  0xac   :  { %v623_v12 = vadd.f32 %v465_v9, %v159_v11 }
  0xae   :  { %v626_v13 = vmul.f32 0.70710677, %v623_v12 }
  0xb0   :  { %v168_v15 = vmul.f32 %v626_v13, %v626_v13 }
  0xb2   :  { %v169_v17 = vmin.f32 %v168_v15, 16.0 }
  0xb3   :  { %v161_v18 = vpop.f32.mrf.mxu0 }
  0xb4   :  { %v170_v19 = vmul.f32 2.1237322e-06, %v169_v17  ;;  %v630_v20 = vadd.f32 %v465_v9, %v161_v18  ;;  %v181_v22 = vmul.f32 3.8918573e-05, %v169_v17 }
  0xb6   :  { %v171_v23 = vadd.f32 0.00028619796, %v170_v19  ;;  %v633_v24 = vmul.f32 0.70710677, %v630_v20  ;;  %v182_v25 = vadd.f32 0.001143296, %v181_v22 }
  0xb8   :  { %v208_v26 = vmul.f32 %v633_v24, %v633_v24  ;;  %v172_v28 = vmul.f32 %v171_v23, %v169_v17  ;;  %v183_v29 = vmul.f32 %v182_v25, %v169_v17 }
  0xba   :  { %v209_v30 = vmin.f32 %v208_v26, 16.0  ;;  %v184_v31 = vadd.f32 0.014752088, %v183_v29  ;;  %v173_v35 = vadd.f32 0.0036580483, %v172_v28 }
  0xbc   :  { %v210_v32 = vmul.f32 2.1237322e-06, %v209_v30  ;;  %v221_v34 = vmul.f32 3.8918573e-05, %v209_v30  ;;  %v185_v36 = vmul.f32 %v184_v31, %v169_v17  ;;  %v174_v43 = vmul.f32 %v173_v35, %v169_v17 }
  0xbd   :  { %v165_v35 = vmul.f32 0.5, %v630_v20 }
  0xbe   :  { %v211_v37 = vadd.f32 0.00028619796, %v210_v32  ;;  %v222_v38 = vadd.f32 0.001143296, %v221_v34  ;;  %v186_v39 = vadd.f32 0.112945676, %v185_v36 }
  0xbf   :  { %v175_v50 = vadd.f32 0.05243302, %v174_v43  ;;  %v164_v34 = vmul.f32 0.5, %v623_v12 }
  0xc0   :  { %v212_v40 = vmul.f32 %v211_v37, %v209_v30  ;;  %v223_v42 = vmul.f32 %v222_v38, %v209_v30  ;;  %v187_v44 = vmul.f32 %v186_v39, %v169_v17 }
  0xc1   :  { %v176_v56 = vmul.f32 %v175_v50, %v169_v17 }
  0xc2   :  { %v213_v45 = vadd.f32 0.0036580483, %v212_v40  ;;  %v224_v46 = vadd.f32 0.014752088, %v223_v42  ;;  %v188_v47 = vadd.f32 0.4994258, %v187_v44 }
  0xc3   :  { %v177_v60 = vadd.f32 0.18741608, %v176_v56 }
  0xc4   :  { %v225_v49 = vmul.f32 %v224_v46, %v209_v30  ;;  %v189_v51 = vmul.f32 %v188_v47, %v169_v17  ;;  %v214_v52 = vmul.f32 %v213_v45, %v209_v30 }
  0xc5   :  { %v178_v1 = vmul.f32 %v177_v60, %v169_v17 }
  0xc6   :  { %v226_v53 = vadd.f32 0.112945676, %v225_v49  ;;  %v190_v54 = vadd.f32 1.0, %v189_v51  ;;  %v215_v57 = vadd.f32 0.05243302, %v214_v52 }
  0xc7   :  { %v179_v7 = vadd.f32 1.1283791, %v178_v1 }
  0xc8   :  { %v227_v55 = vmul.f32 %v226_v53, %v209_v30  ;;  %467 = vrcp.f32 %v190_v54  ;;  %v216_v61 = vmul.f32 %v215_v57, %v209_v30  ;;  %v202_v4 = vand.u32 2147483648, %v190_v54 }
  0xc9   :  { %v200_v6 = vand.u32 2147483647, %v190_v54  ;;  %vm196_vm1 = vweird.f32 %v190_v54  ;;  %v180_v16 = vmul.f32 %v179_v7, %v626_v13 }
  0xca   :  { %v228_v58 = vadd.f32 0.4994258, %v227_v55  ;;  %v217_v2 = vadd.f32 0.18741608, %v216_v61  ;;  %v203_v11 = vor.u32 1.1754944e-38, %v202_v4 }
  0xcb   :  { %vm201_vm3 = vcmp.eq.f32.partialorder %v200_v6, 8.507059e+37 }
  0xcc   :  { %v229_v59 = vmul.f32 %v228_v58, %v209_v30  ;;  %v218_v9 = vmul.f32 %v217_v2, %v209_v30 }
  0xce   :  { %v230_v62 = vadd.f32 1.0, %v229_v59  ;;  %v468_v63 = vpop.eup %467  ;;  %v219_v19 = vadd.f32 1.1283791, %v218_v9 }
  0xcf   :  { %v192_v0 = vmul.f32 %v468_v63, %v190_v54  ;;  %vm197_vm0 = vweird.f32 %v468_v63 }
  0xd0   :  { %469 = vrcp.f32 %v230_v62  ;;  %vm198_vm2 = vmor %vm196_vm1, %vm197_vm0  ;;  %v242_v21 = vand.u32 2147483648, %v230_v62  ;;  %v240_v25 = vand.u32 2147483647, %v230_v62  ;;  %vm236_vm5 = vweird.f32 %v230_v62 }
  0xd1   :  { %v193_v3 = vsub.f32 1.0, %v192_v0  ;;  %v220_v28 = vmul.f32 %v219_v19, %v633_v24  ;;  %v466_v24 = vld [vmem:[%s651_s4] ss:$0 sm:$0xff] }
  0xd2   :  { %v243_v27 = vor.u32 1.1754944e-38, %v242_v21  ;;  %vm241_vm7 = vcmp.eq.f32.partialorder %v240_v25, 8.507059e+37 }
  0xd3   :  { %v194_v5 = vmul.f32 %v468_v63, %v193_v3 }
  0xd5   :  { %v195_v10 = vadd.f32 %v468_v63, %v194_v5 }
  0xd6   :  { %v470_v8 = vpop.eup %469 }
  0xd7   :  { %v232_v14 = vmul.f32 %v470_v8, %v230_v62  ;;  %v199_v15 = vsel %vm198_vm2, %v468_v63, %v195_v10  ;;  %vm237_vm4 = vweird.f32 %v470_v8 }
  0xd8   :  { %v204_v18 = vsel %vm201_vm3, %v203_v11, %v199_v15  ;;  %vm238_vm6 = vmor %vm236_vm5, %vm237_vm4 }
  0xd9   :  { %v233_v17 = vsub.f32 1.0, %v232_v14  ;;  %v205_v22 = vmul.f32 %v204_v18, %v180_v16 }
  0xdb   :  { %v234_v23 = vmul.f32 %v470_v8, %v233_v17  ;;  %v406_v29 = vclamps-f32 %v205_v22, 1.0 }
  0xdd   :  { %v235_v26 = vadd.f32 %v470_v8, %v234_v23  ;;  %v248_v33 = vadd.f32 1.0, %v406_v29 }
  0xdf   :  { %v239_v30 = vsel %vm238_vm6, %v470_v8, %v235_v26  ;;  %v250_v37 = vmul.f32 %v248_v33, %v164_v34 }
  0xe0   :  { %v244_v31 = vsel %vm241_vm7, %v243_v27, %v239_v30 }
  0xe1   :  { %v245_v32 = vmul.f32 %v244_v31, %v220_v28 }
  0xe3   :  { %v407_v13 = vclamps-f32 %v245_v32, 1.0 }
  0xe5   :  { %v249_v36 = vadd.f32 1.0, %v407_v13 }
  0xe7   :  { %v251_v38 = vmul.f32 %v249_v36, %v165_v35 }
  0xe9   :  { %v254_v39 = vpack.c.bf16 %v251_v38, %v250_v37 }
  0xeb   :  { %327 = vmatmul.bf16.vlgmr.msra.gmra.mxu1 %v254_v39 }
 0x168   :  { %v328_v40 = vpop.f32.mrf.mxu1 }
 0x169   :  { %v346_v41 = vadd.f32 %v466_v24, %v328_v40 }
 0x16b   :  { %348 = vst [vmem:[#allocation9] sm:$0xff] %v346_v41 }
 0x170   :  { %v330_v12 = vpop.f32.mrf.mxu1 }
 0x171   :  { %v347_v20 = vadd.f32 %v466_v24, %v330_v12 }
 0x173   :  { %349 = vst [vmem:[#allocation9 + $0x8] sm:$0xff] %v347_v20 }
 0x174   :  { %362 = dma.vmem_to_hbm [thread:$0]  %s355_s11, 256, %s357_s14, [#allocation5], %s579_s15, %s579_s15, %s580_s16  }
 0x175   :  { %571 = dma.done.wait [#allocation5], 256  }
 0x176   :  { %572 = vsyncadd [#allocation5], 4294967040 }
 0x177   :  { %367 = vsyncpa [#allocation4], 1 }
 0x178   :  { %368 = vsyncpa [#allocation7], 1 }
 0x179   :  { %369 = vsyncpa [#allocation5], 1 }

</bundles_post_ra>
